<compile_context>
chip_gen: v7x
topology: tpu7x:2x2x1
jax: 0.10.0
libtpu: 0.0.40
codegen_flags: <defaults>
</compile_context>

<pallas_src>
import functools

import jax
import jax.numpy as jnp
from jax.experimental import pallas as pl
from jax.experimental.pallas import tpu as pltpu  # noqa: F401  (TPU backend)


# ----------------------------- Pallas kernel ------------------------------- #

def fused_ruud_kernel(h0_ref, a_ref, wkg_ref, sel_ref, v_ref, aq_ref, wq_ref,
                      o_ref, *, num_layers, num_relations, emb_dim):
    """Fused forward: KG RGCN stack -> anchor gather -> query RGCN stack -> sum.

    wkg_ref / wq_ref are [L, D, (R+1)*D] with layer l laid out as
    [W_self_l | W_r0_l | ... | W_r{R-1}_l]; a_ref / aq_ref are [R, N, N] /
    [R, Q, Q] dense relational adjacencies (A[r, dst, src]).
    """
    D = emb_dim
    R = num_relations

    def rgcn_stack(h, adj_ref, w_ref):
        for l in range(num_layers):
            # Single 128-lane-wide matmul covering self-loop + all relations.
            hw = jnp.dot(h, w_ref[l], preferred_element_type=jnp.float32)
            h_new = hw[:, :D]                                   # H @ W_self
            for r in range(R):                                  # static unroll
                h_new = h_new + jnp.dot(
                    adj_ref[r], hw[:, (r + 1) * D:(r + 2) * D],
                    preferred_element_type=jnp.float32)         # A_r @ (H W_r)
            h = jnp.maximum(h_new, 0.0) if l < num_layers - 1 else h_new
        return h

    # --- node_RGCN over the knowledge graph (embeddings=None -> own table) ---
    h = rgcn_stack(h0_ref[...], a_ref, wkg_ref)

    # --- sorted-anchor gather + variable embeddings:  Hq0 = Sel @ H + V ------
    hq = jnp.dot(sel_ref[...], h, preferred_element_type=jnp.float32) + v_ref[...]

    # --- ruud_MPQE: RGCN over the query graph --------------------------------
    hq = rgcn_stack(hq, aq_ref, wq_ref)

    # readout='mp', scatter_op='add' -> additive readout over query-graph nodes
    # TODO(synk): exact internals of ruud_MPQE's 'mp' readout (possible extra
    # MP step before pooling) are not in the provided source; a scatter-add
    # (sum) readout over the query graph is implemented here.
    o_ref[...] = jnp.sum(hq, axis=0, keepdims=True)


# ------------------------------- JAX glue ----------------------------------- #

def build_dense_adj(edge_index, edge_type, num_relations, num_nodes):
    src, dst = edge_index[0], edge_index[1]
    A = jnp.zeros((num_relations, num_nodes, num_nodes), jnp.float32)
    return A.at[edge_type, dst, src].add(1.0)


def stack_layer_weights(w_self_list, w_rel_list):
    """Per layer: [D, (R+1)*D] = [W_self | W_r0 | ... | W_r{R-1}]; stack layers."""
    cats = []
    for w_self, w_rel in zip(w_self_list, w_rel_list):
        R, D, _ = w_rel.shape
        w_rel_flat = jnp.transpose(w_rel, (1, 0, 2)).reshape(D, R * D)
        cats.append(jnp.concatenate([w_self, w_rel_flat], axis=1))
    return jnp.stack(cats, axis=0)  # [L, D, (R+1)*D]


def init_params(key, num_nodes, num_relations, emb_dim, num_layers, num_vars):
    ks = jax.random.split(key, 4 + 4 * num_layers)
    scale = 0.1
    params = {
        "node_emb": scale * jax.random.normal(ks[0], (num_nodes, emb_dim), jnp.float32),
        "var_emb": scale * jax.random.normal(ks[1], (num_vars, emb_dim), jnp.float32),
        "rgcn_w_rel": [], "rgcn_w_self": [],
        "mpqe_w_rel": [], "mpqe_w_self": [],
    }
    for layer in range(num_layers):
        k0, k1, k2, k3 = ks[4 + 4 * layer: 8 + 4 * layer]
        params["rgcn_w_rel"].append(
            scale * jax.random.normal(k0, (num_relations, emb_dim, emb_dim), jnp.float32))
        params["rgcn_w_self"].append(
            scale * jax.random.normal(k1, (emb_dim, emb_dim), jnp.float32))
        params["mpqe_w_rel"].append(
            scale * jax.random.normal(k2, (num_relations, emb_dim, emb_dim), jnp.float32))
        params["mpqe_w_self"].append(
            scale * jax.random.normal(k3, (emb_dim, emb_dim), jnp.float32))
    return params


def ruud_model_forward(params, edge_index, edge_type, raw_query,
                       q_edge_index, q_edge_type, var_ids):
    node_emb = params["node_emb"]
    N, D = node_emb.shape
    R = params["rgcn_w_rel"][0].shape[0]
    L = len(params["rgcn_w_rel"])

    # Dense relational adjacencies (glue; at real graph scale this would move
    # to a scalar-prefetched edge-list / block-sparse formulation).
    A = build_dense_adj(edge_index, edge_type, R, N)

    # Static anchor selection (mirrors the PyTorch python loop over sorted
    # anchors) expressed as a 0/1 matrix so the gather stays in-kernel.
    anchors = sorted(raw_query["anchors"])
    na = len(anchors)
    var_feats = params["var_emb"][var_ids].astype(jnp.float32)
    Q = na + int(var_feats.shape[0])
    sel = jnp.zeros((Q, N), jnp.float32).at[
        jnp.arange(na), jnp.asarray(anchors, dtype=jnp.int32)].set(1.0)
    v = jnp.concatenate([jnp.zeros((na, D), jnp.float32), var_feats], axis=0)

    Aq = build_dense_adj(q_edge_index, q_edge_type, R, Q)

    # Pack weights: one 128-lane-wide matrix per layer.
    w_kg = stack_layer_weights(params["rgcn_w_self"], params["rgcn_w_rel"])
    w_q = stack_layer_weights(params["mpqe_w_self"], params["mpqe_w_rel"])

    kernel = functools.partial(fused_ruud_kernel, num_layers=L,
                               num_relations=R, emb_dim=D)
    W = (R + 1) * D
    return pl.pallas_call(
        kernel,
        out_shape=jax.ShapeDtypeStruct((1, D), jnp.float32),
        in_specs=[
            pl.BlockSpec((N, D), lambda: (0, 0)),        # H0
            pl.BlockSpec((R, N, N), lambda: (0, 0, 0)),  # A (KG)
            pl.BlockSpec((L, D, W), lambda: (0, 0, 0)),  # packed KG weights
            pl.BlockSpec((Q, N), lambda: (0, 0)),        # anchor selection
            pl.BlockSpec((Q, D), lambda: (0, 0)),        # variable init feats
            pl.BlockSpec((R, Q, Q), lambda: (0, 0, 0)),  # A (query graph)
            pl.BlockSpec((L, D, W), lambda: (0, 0, 0)),  # packed MPQE weights
        ],
        out_specs=pl.BlockSpec((1, D), lambda: (0, 0)),
    )(node_emb, A, w_kg, sel, v, Aq, w_q)


# --------------------------------- main ------------------------------------- #

if __name__ == "__main__":
    num_nodes = 16
    num_relations = 3
    emb_dim = 32
    num_layers = 3
    num_edges = 24

    key = jax.random.PRNGKey(0)
    k_params, k_src, k_dst, k_rel, k_qsrc, k_qdst, k_qrel = jax.random.split(key, 7)

    # Knowledge-graph edges.
    src = jax.random.randint(k_src, (num_edges,), 0, num_nodes)
    dst = jax.random.randint(k_dst, (num_edges,), 0, num_nodes)
    edge_index = jnp.stack([src, dst], axis=0)                     # [2, E]
    edge_type = jax.random.randint(k_rel, (num_edges,), 0, num_relations)

    # Query structure: 2 anchors + 6 variable nodes -> Q = 8 query-graph nodes.
    raw_query = {"anchors": [5, 1]}
    var_ids = jnp.arange(6, dtype=jnp.int32)
    Q = len(raw_query["anchors"]) + int(var_ids.shape[0])
    num_q_edges = 10
    q_src = jax.random.randint(k_qsrc, (num_q_edges,), 0, Q)
    q_dst = jax.random.randint(k_qdst, (num_q_edges,), 0, Q)
    q_edge_index = jnp.stack([q_src, q_dst], axis=0)               # [2, Eq]
    q_edge_type = jax.random.randint(k_qrel, (num_q_edges,), 0, num_relations)

    params = init_params(k_params, num_nodes, num_relations, emb_dim,
                         num_layers, num_vars=int(var_ids.shape[0]))

    query_embedding = ruud_model_forward(
        params, edge_index, edge_type, raw_query,
        q_edge_index, q_edge_type, var_ids)
    query_embedding = jax.block_until_ready(query_embedding)

    assert query_embedding.shape == (1, emb_dim)
    assert bool(jnp.all(jnp.isfinite(query_embedding)))
    print("KERNEL_OK")
</pallas_src>

<mosaic_0001>
module attributes {stable_mosaic.version = 11 : i64} {
  func.func @fused_ruud_kernel(%arg0: memref<16x32xf32, #tpu.memory_space<vmem>>, %arg1: memref<3x16x16xf32, #tpu.memory_space<vmem>>, %arg2: memref<3x32x128xf32, #tpu.memory_space<vmem>>, %arg3: memref<8x16xf32, #tpu.memory_space<vmem>>, %arg4: memref<8x32xf32, #tpu.memory_space<vmem>>, %arg5: memref<3x8x8xf32, #tpu.memory_space<vmem>>, %arg6: memref<3x32x128xf32, #tpu.memory_space<vmem>>, %arg7: memref<1x32xf32, #tpu.memory_space<vmem>>) attributes {dimension_semantics = [], scalar_prefetch = 0 : i64, scratch_operands = 0 : i64, tpu.core_type = #tpu.core_type<tc>} {
    %c0 = arith.constant 0 : index
    %c0_0 = arith.constant 0 : index
    %0 = vector.load %arg0[%c0, %c0_0] : memref<16x32xf32, #tpu.memory_space<vmem>>, vector<16x32xf32>
    %c0_1 = arith.constant 0 : index
    %c0_2 = arith.constant 0 : index
    %c0_3 = arith.constant 0 : index
    %1 = vector.load %arg2[%c0_1, %c0_2, %c0_3] : memref<3x32x128xf32, #tpu.memory_space<vmem>>, vector<1x32x128xf32>
    %2 = vector.shape_cast %1 : vector<1x32x128xf32> to vector<32x128xf32>
    %cst = arith.constant dense<0.000000e+00> : vector<16x128xf32>
    %3 = tpu.matmul %0, %2, %cst {dimension_numbers = #tpu.dot_dimension_numbers<[1], [0], [0], [1], [0, 0, 1, 1], [], []>} : vector<16x32xf32>, vector<32x128xf32>, vector<16x128xf32> -> vector<16x128xf32>
    %4 = vector.extract_strided_slice %3 {offsets = [0, 0], sizes = [16, 32], strides = [1, 1]} : vector<16x128xf32> to vector<16x32xf32>
    %c0_4 = arith.constant 0 : index
    %c0_5 = arith.constant 0 : index
    %c0_6 = arith.constant 0 : index
    %5 = vector.load %arg1[%c0_4, %c0_5, %c0_6] : memref<3x16x16xf32, #tpu.memory_space<vmem>>, vector<1x16x16xf32>
    %6 = vector.shape_cast %5 : vector<1x16x16xf32> to vector<16x16xf32>
    %7 = vector.extract_strided_slice %3 {offsets = [0, 32], sizes = [16, 32], strides = [1, 1]} : vector<16x128xf32> to vector<16x32xf32>
    %cst_7 = arith.constant dense<0.000000e+00> : vector<16x32xf32>
    %8 = tpu.matmul %6, %7, %cst_7 {dimension_numbers = #tpu.dot_dimension_numbers<[1], [0], [0], [1], [0, 0, 1, 1], [], []>} : vector<16x16xf32>, vector<16x32xf32>, vector<16x32xf32> -> vector<16x32xf32>
    %9 = arith.addf %4, %8 : vector<16x32xf32>
    %c1 = arith.constant 1 : index
    %c0_8 = arith.constant 0 : index
    %c0_9 = arith.constant 0 : index
    %10 = vector.load %arg1[%c1, %c0_8, %c0_9] : memref<3x16x16xf32, #tpu.memory_space<vmem>>, vector<1x16x16xf32>
    %11 = vector.shape_cast %10 : vector<1x16x16xf32> to vector<16x16xf32>
    %12 = vector.extract_strided_slice %3 {offsets = [0, 64], sizes = [16, 32], strides = [1, 1]} : vector<16x128xf32> to vector<16x32xf32>
    %cst_10 = arith.constant dense<0.000000e+00> : vector<16x32xf32>
    %13 = tpu.matmul %11, %12, %cst_10 {dimension_numbers = #tpu.dot_dimension_numbers<[1], [0], [0], [1], [0, 0, 1, 1], [], []>} : vector<16x16xf32>, vector<16x32xf32>, vector<16x32xf32> -> vector<16x32xf32>
    %14 = arith.addf %9, %13 : vector<16x32xf32>
    %c2 = arith.constant 2 : index
    %c0_11 = arith.constant 0 : index
    %c0_12 = arith.constant 0 : index
    %15 = vector.load %arg1[%c2, %c0_11, %c0_12] : memref<3x16x16xf32, #tpu.memory_space<vmem>>, vector<1x16x16xf32>
    %16 = vector.shape_cast %15 : vector<1x16x16xf32> to vector<16x16xf32>
    %17 = vector.extract_strided_slice %3 {offsets = [0, 96], sizes = [16, 32], strides = [1, 1]} : vector<16x128xf32> to vector<16x32xf32>
    %cst_13 = arith.constant dense<0.000000e+00> : vector<16x32xf32>
    %18 = tpu.matmul %16, %17, %cst_13 {dimension_numbers = #tpu.dot_dimension_numbers<[1], [0], [0], [1], [0, 0, 1, 1], [], []>} : vector<16x16xf32>, vector<16x32xf32>, vector<16x32xf32> -> vector<16x32xf32>
    %19 = arith.addf %14, %18 : vector<16x32xf32>
    %cst_14 = arith.constant 0.000000e+00 : f32
    %20 = vector.broadcast %cst_14 : f32 to vector<16x32xf32>
    %21 = arith.maximumf %19, %20 : vector<16x32xf32>
    %c1_15 = arith.constant 1 : index
    %c0_16 = arith.constant 0 : index
    %c0_17 = arith.constant 0 : index
    %22 = vector.load %arg2[%c1_15, %c0_16, %c0_17] : memref<3x32x128xf32, #tpu.memory_space<vmem>>, vector<1x32x128xf32>
    %23 = vector.shape_cast %22 : vector<1x32x128xf32> to vector<32x128xf32>
    %cst_18 = arith.constant dense<0.000000e+00> : vector<16x128xf32>
    %24 = tpu.matmul %21, %23, %cst_18 {dimension_numbers = #tpu.dot_dimension_numbers<[1], [0], [0], [1], [0, 0, 1, 1], [], []>} : vector<16x32xf32>, vector<32x128xf32>, vector<16x128xf32> -> vector<16x128xf32>
    %25 = vector.extract_strided_slice %24 {offsets = [0, 0], sizes = [16, 32], strides = [1, 1]} : vector<16x128xf32> to vector<16x32xf32>
    %c0_19 = arith.constant 0 : index
    %c0_20 = arith.constant 0 : index
    %c0_21 = arith.constant 0 : index
    %26 = vector.load %arg1[%c0_19, %c0_20, %c0_21] : memref<3x16x16xf32, #tpu.memory_space<vmem>>, vector<1x16x16xf32>
    %27 = vector.shape_cast %26 : vector<1x16x16xf32> to vector<16x16xf32>
    %28 = vector.extract_strided_slice %24 {offsets = [0, 32], sizes = [16, 32], strides = [1, 1]} : vector<16x128xf32> to vector<16x32xf32>
    %cst_22 = arith.constant dense<0.000000e+00> : vector<16x32xf32>
    %29 = tpu.matmul %27, %28, %cst_22 {dimension_numbers = #tpu.dot_dimension_numbers<[1], [0], [0], [1], [0, 0, 1, 1], [], []>} : vector<16x16xf32>, vector<16x32xf32>, vector<16x32xf32> -> vector<16x32xf32>
    %30 = arith.addf %25, %29 : vector<16x32xf32>
    %c1_23 = arith.constant 1 : index
    %c0_24 = arith.constant 0 : index
    %c0_25 = arith.constant 0 : index
    %31 = vector.load %arg1[%c1_23, %c0_24, %c0_25] : memref<3x16x16xf32, #tpu.memory_space<vmem>>, vector<1x16x16xf32>
    %32 = vector.shape_cast %31 : vector<1x16x16xf32> to vector<16x16xf32>
    %33 = vector.extract_strided_slice %24 {offsets = [0, 64], sizes = [16, 32], strides = [1, 1]} : vector<16x128xf32> to vector<16x32xf32>
    %cst_26 = arith.constant dense<0.000000e+00> : vector<16x32xf32>
    %34 = tpu.matmul %32, %33, %cst_26 {dimension_numbers = #tpu.dot_dimension_numbers<[1], [0], [0], [1], [0, 0, 1, 1], [], []>} : vector<16x16xf32>, vector<16x32xf32>, vector<16x32xf32> -> vector<16x32xf32>
    %35 = arith.addf %30, %34 : vector<16x32xf32>
    %c2_27 = arith.constant 2 : index
    %c0_28 = arith.constant 0 : index
    %c0_29 = arith.constant 0 : index
    %36 = vector.load %arg1[%c2_27, %c0_28, %c0_29] : memref<3x16x16xf32, #tpu.memory_space<vmem>>, vector<1x16x16xf32>
    %37 = vector.shape_cast %36 : vector<1x16x16xf32> to vector<16x16xf32>
    %38 = vector.extract_strided_slice %24 {offsets = [0, 96], sizes = [16, 32], strides = [1, 1]} : vector<16x128xf32> to vector<16x32xf32>
    %cst_30 = arith.constant dense<0.000000e+00> : vector<16x32xf32>
    %39 = tpu.matmul %37, %38, %cst_30 {dimension_numbers = #tpu.dot_dimension_numbers<[1], [0], [0], [1], [0, 0, 1, 1], [], []>} : vector<16x16xf32>, vector<16x32xf32>, vector<16x32xf32> -> vector<16x32xf32>
    %40 = arith.addf %35, %39 : vector<16x32xf32>
    %cst_31 = arith.constant 0.000000e+00 : f32
    %41 = vector.broadcast %cst_31 : f32 to vector<16x32xf32>
    %42 = arith.maximumf %40, %41 : vector<16x32xf32>
    %c2_32 = arith.constant 2 : index
    %c0_33 = arith.constant 0 : index
    %c0_34 = arith.constant 0 : index
    %43 = vector.load %arg2[%c2_32, %c0_33, %c0_34] : memref<3x32x128xf32, #tpu.memory_space<vmem>>, vector<1x32x128xf32>
    %44 = vector.shape_cast %43 : vector<1x32x128xf32> to vector<32x128xf32>
    %cst_35 = arith.constant dense<0.000000e+00> : vector<16x128xf32>
    %45 = tpu.matmul %42, %44, %cst_35 {dimension_numbers = #tpu.dot_dimension_numbers<[1], [0], [0], [1], [0, 0, 1, 1], [], []>} : vector<16x32xf32>, vector<32x128xf32>, vector<16x128xf32> -> vector<16x128xf32>
    %46 = vector.extract_strided_slice %45 {offsets = [0, 0], sizes = [16, 32], strides = [1, 1]} : vector<16x128xf32> to vector<16x32xf32>
    %c0_36 = arith.constant 0 : index
    %c0_37 = arith.constant 0 : index
    %c0_38 = arith.constant 0 : index
    %47 = vector.load %arg1[%c0_36, %c0_37, %c0_38] : memref<3x16x16xf32, #tpu.memory_space<vmem>>, vector<1x16x16xf32>
    %48 = vector.shape_cast %47 : vector<1x16x16xf32> to vector<16x16xf32>
    %49 = vector.extract_strided_slice %45 {offsets = [0, 32], sizes = [16, 32], strides = [1, 1]} : vector<16x128xf32> to vector<16x32xf32>
    %cst_39 = arith.constant dense<0.000000e+00> : vector<16x32xf32>
    %50 = tpu.matmul %48, %49, %cst_39 {dimension_numbers = #tpu.dot_dimension_numbers<[1], [0], [0], [1], [0, 0, 1, 1], [], []>} : vector<16x16xf32>, vector<16x32xf32>, vector<16x32xf32> -> vector<16x32xf32>
    %51 = arith.addf %46, %50 : vector<16x32xf32>
    %c1_40 = arith.constant 1 : index
    %c0_41 = arith.constant 0 : index
    %c0_42 = arith.constant 0 : index
    %52 = vector.load %arg1[%c1_40, %c0_41, %c0_42] : memref<3x16x16xf32, #tpu.memory_space<vmem>>, vector<1x16x16xf32>
    %53 = vector.shape_cast %52 : vector<1x16x16xf32> to vector<16x16xf32>
    %54 = vector.extract_strided_slice %45 {offsets = [0, 64], sizes = [16, 32], strides = [1, 1]} : vector<16x128xf32> to vector<16x32xf32>
    %cst_43 = arith.constant dense<0.000000e+00> : vector<16x32xf32>
    %55 = tpu.matmul %53, %54, %cst_43 {dimension_numbers = #tpu.dot_dimension_numbers<[1], [0], [0], [1], [0, 0, 1, 1], [], []>} : vector<16x16xf32>, vector<16x32xf32>, vector<16x32xf32> -> vector<16x32xf32>
    %56 = arith.addf %51, %55 : vector<16x32xf32>
    %c2_44 = arith.constant 2 : index
    %c0_45 = arith.constant 0 : index
    %c0_46 = arith.constant 0 : index
    %57 = vector.load %arg1[%c2_44, %c0_45, %c0_46] : memref<3x16x16xf32, #tpu.memory_space<vmem>>, vector<1x16x16xf32>
    %58 = vector.shape_cast %57 : vector<1x16x16xf32> to vector<16x16xf32>
    %59 = vector.extract_strided_slice %45 {offsets = [0, 96], sizes = [16, 32], strides = [1, 1]} : vector<16x128xf32> to vector<16x32xf32>
    %cst_47 = arith.constant dense<0.000000e+00> : vector<16x32xf32>
    %60 = tpu.matmul %58, %59, %cst_47 {dimension_numbers = #tpu.dot_dimension_numbers<[1], [0], [0], [1], [0, 0, 1, 1], [], []>} : vector<16x16xf32>, vector<16x32xf32>, vector<16x32xf32> -> vector<16x32xf32>
    %61 = arith.addf %56, %60 : vector<16x32xf32>
    %c0_48 = arith.constant 0 : index
    %c0_49 = arith.constant 0 : index
    %62 = vector.load %arg3[%c0_48, %c0_49] : memref<8x16xf32, #tpu.memory_space<vmem>>, vector<8x16xf32>
    %cst_50 = arith.constant dense<0.000000e+00> : vector<8x32xf32>
    %63 = tpu.matmul %62, %61, %cst_50 {dimension_numbers = #tpu.dot_dimension_numbers<[1], [0], [0], [1], [0, 0, 1, 1], [], []>} : vector<8x16xf32>, vector<16x32xf32>, vector<8x32xf32> -> vector<8x32xf32>
    %c0_51 = arith.constant 0 : index
    %c0_52 = arith.constant 0 : index
    %64 = vector.load %arg4[%c0_51, %c0_52] : memref<8x32xf32, #tpu.memory_space<vmem>>, vector<8x32xf32>
    %65 = arith.addf %63, %64 : vector<8x32xf32>
    %c0_53 = arith.constant 0 : index
    %c0_54 = arith.constant 0 : index
    %c0_55 = arith.constant 0 : index
    %66 = vector.load %arg6[%c0_53, %c0_54, %c0_55] : memref<3x32x128xf32, #tpu.memory_space<vmem>>, vector<1x32x128xf32>
    %67 = vector.shape_cast %66 : vector<1x32x128xf32> to vector<32x128xf32>
    %cst_56 = arith.constant dense<0.000000e+00> : vector<8x128xf32>
    %68 = tpu.matmul %65, %67, %cst_56 {dimension_numbers = #tpu.dot_dimension_numbers<[1], [0], [0], [1], [0, 0, 1, 1], [], []>} : vector<8x32xf32>, vector<32x128xf32>, vector<8x128xf32> -> vector<8x128xf32>
    %69 = vector.extract_strided_slice %68 {offsets = [0, 0], sizes = [8, 32], strides = [1, 1]} : vector<8x128xf32> to vector<8x32xf32>
    %c0_57 = arith.constant 0 : index
    %c0_58 = arith.constant 0 : index
    %c0_59 = arith.constant 0 : index
    %70 = vector.load %arg5[%c0_57, %c0_58, %c0_59] : memref<3x8x8xf32, #tpu.memory_space<vmem>>, vector<1x8x8xf32>
    %71 = vector.shape_cast %70 : vector<1x8x8xf32> to vector<8x8xf32>
    %72 = vector.extract_strided_slice %68 {offsets = [0, 32], sizes = [8, 32], strides = [1, 1]} : vector<8x128xf32> to vector<8x32xf32>
    %cst_60 = arith.constant dense<0.000000e+00> : vector<8x32xf32>
    %73 = tpu.matmul %71, %72, %cst_60 {dimension_numbers = #tpu.dot_dimension_numbers<[1], [0], [0], [1], [0, 0, 1, 1], [], []>} : vector<8x8xf32>, vector<8x32xf32>, vector<8x32xf32> -> vector<8x32xf32>
    %74 = arith.addf %69, %73 : vector<8x32xf32>
    %c1_61 = arith.constant 1 : index
    %c0_62 = arith.constant 0 : index
    %c0_63 = arith.constant 0 : index
    %75 = vector.load %arg5[%c1_61, %c0_62, %c0_63] : memref<3x8x8xf32, #tpu.memory_space<vmem>>, vector<1x8x8xf32>
    %76 = vector.shape_cast %75 : vector<1x8x8xf32> to vector<8x8xf32>
    %77 = vector.extract_strided_slice %68 {offsets = [0, 64], sizes = [8, 32], strides = [1, 1]} : vector<8x128xf32> to vector<8x32xf32>
    %cst_64 = arith.constant dense<0.000000e+00> : vector<8x32xf32>
    %78 = tpu.matmul %76, %77, %cst_64 {dimension_numbers = #tpu.dot_dimension_numbers<[1], [0], [0], [1], [0, 0, 1, 1], [], []>} : vector<8x8xf32>, vector<8x32xf32>, vector<8x32xf32> -> vector<8x32xf32>
    %79 = arith.addf %74, %78 : vector<8x32xf32>
    %c2_65 = arith.constant 2 : index
    %c0_66 = arith.constant 0 : index
    %c0_67 = arith.constant 0 : index
    %80 = vector.load %arg5[%c2_65, %c0_66, %c0_67] : memref<3x8x8xf32, #tpu.memory_space<vmem>>, vector<1x8x8xf32>
    %81 = vector.shape_cast %80 : vector<1x8x8xf32> to vector<8x8xf32>
    %82 = vector.extract_strided_slice %68 {offsets = [0, 96], sizes = [8, 32], strides = [1, 1]} : vector<8x128xf32> to vector<8x32xf32>
    %cst_68 = arith.constant dense<0.000000e+00> : vector<8x32xf32>
    %83 = tpu.matmul %81, %82, %cst_68 {dimension_numbers = #tpu.dot_dimension_numbers<[1], [0], [0], [1], [0, 0, 1, 1], [], []>} : vector<8x8xf32>, vector<8x32xf32>, vector<8x32xf32> -> vector<8x32xf32>
    %84 = arith.addf %79, %83 : vector<8x32xf32>
    %cst_69 = arith.constant 0.000000e+00 : f32
    %85 = vector.broadcast %cst_69 : f32 to vector<8x32xf32>
    %86 = arith.maximumf %84, %85 : vector<8x32xf32>
    %c1_70 = arith.constant 1 : index
    %c0_71 = arith.constant 0 : index
    %c0_72 = arith.constant 0 : index
    %87 = vector.load %arg6[%c1_70, %c0_71, %c0_72] : memref<3x32x128xf32, #tpu.memory_space<vmem>>, vector<1x32x128xf32>
    %88 = vector.shape_cast %87 : vector<1x32x128xf32> to vector<32x128xf32>
    %cst_73 = arith.constant dense<0.000000e+00> : vector<8x128xf32>
    %89 = tpu.matmul %86, %88, %cst_73 {dimension_numbers = #tpu.dot_dimension_numbers<[1], [0], [0], [1], [0, 0, 1, 1], [], []>} : vector<8x32xf32>, vector<32x128xf32>, vector<8x128xf32> -> vector<8x128xf32>
    %90 = vector.extract_strided_slice %89 {offsets = [0, 0], sizes = [8, 32], strides = [1, 1]} : vector<8x128xf32> to vector<8x32xf32>
    %c0_74 = arith.constant 0 : index
    %c0_75 = arith.constant 0 : index
    %c0_76 = arith.constant 0 : index
    %91 = vector.load %arg5[%c0_74, %c0_75, %c0_76] : memref<3x8x8xf32, #tpu.memory_space<vmem>>, vector<1x8x8xf32>
    %92 = vector.shape_cast %91 : vector<1x8x8xf32> to vector<8x8xf32>
    %93 = vector.extract_strided_slice %89 {offsets = [0, 32], sizes = [8, 32], strides = [1, 1]} : vector<8x128xf32> to vector<8x32xf32>
    %cst_77 = arith.constant dense<0.000000e+00> : vector<8x32xf32>
    %94 = tpu.matmul %92, %93, %cst_77 {dimension_numbers = #tpu.dot_dimension_numbers<[1], [0], [0], [1], [0, 0, 1, 1], [], []>} : vector<8x8xf32>, vector<8x32xf32>, vector<8x32xf32> -> vector<8x32xf32>
    %95 = arith.addf %90, %94 : vector<8x32xf32>
    %c1_78 = arith.constant 1 : index
    %c0_79 = arith.constant 0 : index
    %c0_80 = arith.constant 0 : index
    %96 = vector.load %arg5[%c1_78, %c0_79, %c0_80] : memref<3x8x8xf32, #tpu.memory_space<vmem>>, vector<1x8x8xf32>
    %97 = vector.shape_cast %96 : vector<1x8x8xf32> to vector<8x8xf32>
    %98 = vector.extract_strided_slice %89 {offsets = [0, 64], sizes = [8, 32], strides = [1, 1]} : vector<8x128xf32> to vector<8x32xf32>
    %cst_81 = arith.constant dense<0.000000e+00> : vector<8x32xf32>
    %99 = tpu.matmul %97, %98, %cst_81 {dimension_numbers = #tpu.dot_dimension_numbers<[1], [0], [0], [1], [0, 0, 1, 1], [], []>} : vector<8x8xf32>, vector<8x32xf32>, vector<8x32xf32> -> vector<8x32xf32>
    %100 = arith.addf %95, %99 : vector<8x32xf32>
    %c2_82 = arith.constant 2 : index
    %c0_83 = arith.constant 0 : index
    %c0_84 = arith.constant 0 : index
    %101 = vector.load %arg5[%c2_82, %c0_83, %c0_84] : memref<3x8x8xf32, #tpu.memory_space<vmem>>, vector<1x8x8xf32>
    %102 = vector.shape_cast %101 : vector<1x8x8xf32> to vector<8x8xf32>
    %103 = vector.extract_strided_slice %89 {offsets = [0, 96], sizes = [8, 32], strides = [1, 1]} : vector<8x128xf32> to vector<8x32xf32>
    %cst_85 = arith.constant dense<0.000000e+00> : vector<8x32xf32>
    %104 = tpu.matmul %102, %103, %cst_85 {dimension_numbers = #tpu.dot_dimension_numbers<[1], [0], [0], [1], [0, 0, 1, 1], [], []>} : vector<8x8xf32>, vector<8x32xf32>, vector<8x32xf32> -> vector<8x32xf32>
    %105 = arith.addf %100, %104 : vector<8x32xf32>
    %cst_86 = arith.constant 0.000000e+00 : f32
    %106 = vector.broadcast %cst_86 : f32 to vector<8x32xf32>
    %107 = arith.maximumf %105, %106 : vector<8x32xf32>
    %c2_87 = arith.constant 2 : index
    %c0_88 = arith.constant 0 : index
    %c0_89 = arith.constant 0 : index
    %108 = vector.load %arg6[%c2_87, %c0_88, %c0_89] : memref<3x32x128xf32, #tpu.memory_space<vmem>>, vector<1x32x128xf32>
    %109 = vector.shape_cast %108 : vector<1x32x128xf32> to vector<32x128xf32>
    %cst_90 = arith.constant dense<0.000000e+00> : vector<8x128xf32>
    %110 = tpu.matmul %107, %109, %cst_90 {dimension_numbers = #tpu.dot_dimension_numbers<[1], [0], [0], [1], [0, 0, 1, 1], [], []>} : vector<8x32xf32>, vector<32x128xf32>, vector<8x128xf32> -> vector<8x128xf32>
    %111 = vector.extract_strided_slice %110 {offsets = [0, 0], sizes = [8, 32], strides = [1, 1]} : vector<8x128xf32> to vector<8x32xf32>
    %c0_91 = arith.constant 0 : index
    %c0_92 = arith.constant 0 : index
    %c0_93 = arith.constant 0 : index
    %112 = vector.load %arg5[%c0_91, %c0_92, %c0_93] : memref<3x8x8xf32, #tpu.memory_space<vmem>>, vector<1x8x8xf32>
    %113 = vector.shape_cast %112 : vector<1x8x8xf32> to vector<8x8xf32>
    %114 = vector.extract_strided_slice %110 {offsets = [0, 32], sizes = [8, 32], strides = [1, 1]} : vector<8x128xf32> to vector<8x32xf32>
    %cst_94 = arith.constant dense<0.000000e+00> : vector<8x32xf32>
    %115 = tpu.matmul %113, %114, %cst_94 {dimension_numbers = #tpu.dot_dimension_numbers<[1], [0], [0], [1], [0, 0, 1, 1], [], []>} : vector<8x8xf32>, vector<8x32xf32>, vector<8x32xf32> -> vector<8x32xf32>
    %116 = arith.addf %111, %115 : vector<8x32xf32>
    %c1_95 = arith.constant 1 : index
    %c0_96 = arith.constant 0 : index
    %c0_97 = arith.constant 0 : index
    %117 = vector.load %arg5[%c1_95, %c0_96, %c0_97] : memref<3x8x8xf32, #tpu.memory_space<vmem>>, vector<1x8x8xf32>
    %118 = vector.shape_cast %117 : vector<1x8x8xf32> to vector<8x8xf32>
    %119 = vector.extract_strided_slice %110 {offsets = [0, 64], sizes = [8, 32], strides = [1, 1]} : vector<8x128xf32> to vector<8x32xf32>
    %cst_98 = arith.constant dense<0.000000e+00> : vector<8x32xf32>
    %120 = tpu.matmul %118, %119, %cst_98 {dimension_numbers = #tpu.dot_dimension_numbers<[1], [0], [0], [1], [0, 0, 1, 1], [], []>} : vector<8x8xf32>, vector<8x32xf32>, vector<8x32xf32> -> vector<8x32xf32>
    %121 = arith.addf %116, %120 : vector<8x32xf32>
    %c2_99 = arith.constant 2 : index
    %c0_100 = arith.constant 0 : index
    %c0_101 = arith.constant 0 : index
    %122 = vector.load %arg5[%c2_99, %c0_100, %c0_101] : memref<3x8x8xf32, #tpu.memory_space<vmem>>, vector<1x8x8xf32>
    %123 = vector.shape_cast %122 : vector<1x8x8xf32> to vector<8x8xf32>
    %124 = vector.extract_strided_slice %110 {offsets = [0, 96], sizes = [8, 32], strides = [1, 1]} : vector<8x128xf32> to vector<8x32xf32>
    %cst_102 = arith.constant dense<0.000000e+00> : vector<8x32xf32>
    %125 = tpu.matmul %123, %124, %cst_102 {dimension_numbers = #tpu.dot_dimension_numbers<[1], [0], [0], [1], [0, 0, 1, 1], [], []>} : vector<8x8xf32>, vector<8x32xf32>, vector<8x32xf32> -> vector<8x32xf32>
    %126 = arith.addf %121, %125 : vector<8x32xf32>
    %cst_103 = arith.constant dense<0.000000e+00> : vector<32xf32>
    %127 = vector.multi_reduction <add>, %126, %cst_103 [0] : vector<8x32xf32> to vector<32xf32>
    %128 = vector.shape_cast %127 : vector<32xf32> to vector<1x32xf32>
    %c0_104 = arith.constant 0 : index
    %c0_105 = arith.constant 0 : index
    %129 = vector.load %arg7[%c0_104, %c0_105] : memref<1x32xf32, #tpu.memory_space<vmem>>, vector<1x32xf32>
    tpu.vector_store %arg7[%c0_104, %c0_105], %128 {strides = array<i32>} : memref<1x32xf32, #tpu.memory_space<vmem>>, vector<1x32xf32>,
    return
  }
}

</mosaic_0001>

<bundles_post_ra>
// kernel: tpu_custom_call.1
= control target key start
LH: loop header
LB: loop body
LE: loop exit
PB: predicated region body
PF: predicated region fallthrough
CT: control target
= control target key end

     0   :  { %12 = vsyncpa [#allocation3], 0  ;;  %s3132_s0 = inlined_call_operand.hbm [shape: f32[16,32], index: 0, kind: input, shape index: {}]   ;;  %s3133_s1 = inlined_call_operand.hbm [shape: f32[3,16,16], index: 1, kind: input, shape index: {}]   ;;  %s3134_s2 = inlined_call_operand.hbm [shape: f32[3,32,128], index: 2, kind: input, shape index: {}]   ;;  %s3135_s3 = inlined_call_operand.vmem [shape: f32[8,16], index: 3, kind: input, shape index: {}]   ;;  %s3136_s4 = inlined_call_operand.hbm [shape: f32[8,32], index: 4, kind: input, shape index: {}]   ;;  %s3137_s5 = inlined_call_operand.hbm [shape: f32[3,8,8], index: 5, kind: input, shape index: {}]   ;;  %s3138_s6 = inlined_call_operand.hbm [shape: f32[3,32,128], index: 6, kind: input, shape index: {}]   ;;  %s3139_s7 = inlined_call_operand.hbm [shape: f32[1,32], index: 7, kind: output, shape index: {}]  }
   0x1   :  { %13 = vsyncpa [#allocation6], 0 }
   0x2   :  { %14 = vsyncpa [#allocation9], 0 }
   0x3   :  { %15 = vsyncpa [#allocation12], 0 }
   0x4   :  { %16 = vsyncpa [#allocation4], 0  ;;  %s2818_s24 = smov [#allocation5]   ;;  %s2819_s26 = smov [#allocation8]  }
   0x5   :  { %s34_s25 = sshll.u32 %s2818_s24, 4  ;;  %s61_s27 = sshll.u32 %s2819_s26, 4  ;;  %s35_s25 = int_to_ptr.vmem [resolvable:$true] %s34_s25  ;;  %s62_s27 = int_to_ptr.vmem [resolvable:$true] %s61_s27 }
   0x6   :  { %s2654_s30 = scalar_lea.hbm %s3133_s1, 768 }
   0x7   :  { %p2655_p0 = scmp.ne.s32.totalorder %s3133_s1, %s2654_s30  ;;  %p2658_p1 = scmp.lt.u32.totalorder %s2654_s30, %s3133_s1 }
   0x9   :  { %p2660_p2 = pnand %p2658_p1, %p2655_p0 }
   0xb   :  { %2663 = shalt.err (!%p2660_p2)
}
   0xc   :  { %s2664_s12 = scalar_lea.vmem %s35_s25, 768  ;;  %p2669_p4 = scmp.lt.s32.totalorder %s35_s25, %s35_s25 }
   0xd   :  { %p2665_p3 = scmp.ne.s32.totalorder %s35_s25, %s2664_s12  ;;  %p2670_p5 = scmp.lt.s32.totalorder %s2664_s12, %s2664_s12 }
   0xf   :  { %p2671_p6 = por %p2670_p5, %p2669_p4 }
  0x11   :  { %p2672_p7 = pnand %p2671_p6, %p2665_p3 }
  0x13   :  { %2675 = shalt.err (!%p2672_p7)
}
  0x14   :  { %s2820_s13 = smov 128   ;;  %s2821_s14 = smov 8  }
  0x15   :  { %40 = dma.hbm_to_vmem [thread:$0]  %s3133_s1, 768, %s35_s25, [#allocation6], %s2820_s13, %s2820_s13, %s2821_s14  }
  0x16   :  { %s2676_s19 = scalar_lea.hbm %s3136_s4, 128 }
  0x17   :  { %p2677_p8 = scmp.ne.s32.totalorder %s3136_s4, %s2676_s19  ;;  %p2680_p9 = scmp.lt.u32.totalorder %s2676_s19, %s3136_s4 }
  0x19   :  { %p2682_p10 = pnand %p2680_p9, %p2677_p8 }
  0x1b   :  { %2685 = shalt.err (!%p2682_p10)
}
  0x1c   :  { %s2686_s24 = scalar_lea.vmem %s62_s27, 128  ;;  %p2691_p12 = scmp.lt.s32.totalorder %s62_s27, %s62_s27 }
  0x1d   :  { %p2687_p11 = scmp.ne.s32.totalorder %s62_s27, %s2686_s24  ;;  %p2692_p13 = scmp.lt.s32.totalorder %s2686_s24, %s2686_s24 }
  0x1f   :  { %p2693_p0 = por %p2692_p13, %p2691_p12 }
  0x21   :  { %p2694_p1 = pnand %p2693_p0, %p2687_p11 }
  0x23   :  { %2697 = shalt.err (!%p2694_p1)
}
  0x24   :  { %64 = dma.hbm_to_vmem [thread:$0]  %s3136_s4, 128, %s62_s27, [#allocation9]  }
  0x25   :  { %s2822_s26 = smov [#allocation2]   ;;  %s2823_s29 = smov [#allocation7]  }
  0x26   :  { %s22_s28 = sshll.u32 %s2822_s26, 4  ;;  %s46_s30 = sshll.u32 %s2823_s29, 4  ;;  %s23_s28 = int_to_ptr.vmem [resolvable:$true] %s22_s28  ;;  %s2900_s30 = int_to_ptr.vmem [resolvable:$true] %s46_s30 }
  0x27   :  { %s2698_s10 = scalar_lea.hbm %s3132_s0, 256 }
  0x28   :  { %p2699_p2 = scmp.ne.s32.totalorder %s3132_s0, %s2698_s10  ;;  %p2702_p3 = scmp.lt.u32.totalorder %s2698_s10, %s3132_s0 }
  0x2a   :  { %p2704_p4 = pnand %p2702_p3, %p2699_p2 }
  0x2c   :  { %2707 = shalt.err (!%p2704_p4)
}
  0x2d   :  { %s2708_s4 = scalar_lea.vmem %s23_s28, 256  ;;  %p2713_p6 = scmp.lt.s32.totalorder %s23_s28, %s23_s28 }
  0x2e   :  { %p2709_p5 = scmp.ne.s32.totalorder %s23_s28, %s2708_s4  ;;  %p2714_p7 = scmp.lt.s32.totalorder %s2708_s4, %s2708_s4 }
  0x30   :  { %p2715_p8 = por %p2714_p7, %p2713_p6 }
  0x32   :  { %p2716_p9 = pnand %p2715_p8, %p2709_p5 }
  0x34   :  { %2719 = shalt.err (!%p2716_p9)
}
  0x35   :  { %28 = dma.hbm_to_vmem [thread:$0]  %s3132_s0, 256, %s23_s28, [#allocation3], %s2820_s13, %s2820_s13, %s2821_s14  }
  0x36   :  { %s2720_s20 = scalar_lea.hbm %s3134_s2, 1536 }
  0x37   :  { %p2721_p10 = scmp.ne.s32.totalorder %s3134_s2, %s2720_s20  ;;  %p2724_p11 = scmp.lt.u32.totalorder %s2720_s20, %s3134_s2 }
  0x39   :  { %p2726_p12 = pnand %p2724_p11, %p2721_p10 }
  0x3b   :  { %2729 = shalt.err (!%p2726_p12)
}
  0x3c   :  { %s2730_s1 = scalar_lea.vmem %s2900_s30, 1536  ;;  %p2735_p0 = scmp.lt.s32.totalorder %s2900_s30, %s2900_s30 }
  0x3d   :  { %p2731_p13 = scmp.ne.s32.totalorder %s2900_s30, %s2730_s1  ;;  %p2736_p1 = scmp.lt.s32.totalorder %s2730_s1, %s2730_s1 }
  0x3f   :  { %p2737_p2 = por %p2736_p1, %p2735_p0 }
  0x41   :  { %p2738_p3 = pnand %p2737_p2, %p2731_p13 }
  0x43   :  { %2741 = shalt.err (!%p2738_p3)
}
  0x44   :  { %52 = dma.hbm_to_vmem [thread:$0]  %s3134_s2, 1536, %s2900_s30, [#allocation6], %s2820_s13, %s2820_s13, %s2821_s14  }
  0x45   :  { %s2824_s26 = smov [#allocation10]   ;;  %s2825_s29 = smov [#allocation11]  }
  0x46   :  { %s70_s28 = sshll.u32 %s2824_s26, 4  ;;  %s82_s8 = sshll.u32 %s2825_s29, 4  ;;  %s71_s28 = int_to_ptr.vmem [resolvable:$true] %s70_s28  ;;  %s2937_s8 = int_to_ptr.vmem [resolvable:$true] %s82_s8 }
  0x47   :  { %s2742_s11 = scalar_lea.hbm %s3137_s5, 384 }
  0x48   :  { %p2743_p4 = scmp.ne.s32.totalorder %s3137_s5, %s2742_s11  ;;  %p2746_p5 = scmp.lt.u32.totalorder %s2742_s11, %s3137_s5 }
  0x4a   :  { %p2748_p6 = pnand %p2746_p5, %p2743_p4 }
  0x4c   :  { %2751 = shalt.err (!%p2748_p6)
}
  0x4d   :  { %s2752_s2 = scalar_lea.vmem %s71_s28, 384  ;;  %p2757_p8 = scmp.lt.s32.totalorder %s71_s28, %s71_s28 }
  0x4e   :  { %p2753_p7 = scmp.ne.s32.totalorder %s71_s28, %s2752_s2  ;;  %p2758_p9 = scmp.lt.s32.totalorder %s2752_s2, %s2752_s2 }
  0x50   :  { %p2759_p10 = por %p2758_p9, %p2757_p8 }
  0x52   :  { %p2760_p11 = pnand %p2759_p10, %p2753_p7 }
  0x54   :  { %2763 = shalt.err (!%p2760_p11)
}
  0x55   :  { %76 = dma.hbm_to_vmem [thread:$0]  %s3137_s5, 384, %s71_s28, [#allocation9], %s2820_s13, %s2820_s13, %s2821_s14  }
  0x56   :  { %s2764_s19 = scalar_lea.hbm %s3138_s6, 1536 }
  0x57   :  { %p2765_p12 = scmp.ne.s32.totalorder %s3138_s6, %s2764_s19  ;;  %p2768_p13 = scmp.lt.u32.totalorder %s2764_s19, %s3138_s6 }
  0x59   :  { %p2770_p0 = pnand %p2768_p13, %p2765_p12 }
  0x5b   :  { %2773 = shalt.err (!%p2770_p0)
}
  0x5c   :  { %s2774_s24 = scalar_lea.vmem %s2937_s8, 1536  ;;  %p2779_p2 = scmp.lt.s32.totalorder %s2937_s8, %s2937_s8 }
  0x5d   :  { %p2775_p1 = scmp.ne.s32.totalorder %s2937_s8, %s2774_s24  ;;  %p2780_p3 = scmp.lt.s32.totalorder %s2774_s24, %s2774_s24 }
  0x5f   :  { %p2781_p4 = por %p2780_p3, %p2779_p2 }
  0x61   :  { %p2782_p5 = pnand %p2781_p4, %p2775_p1 }
  0x63   :  { %2785 = shalt.err (!%p2782_p5)
}
  0x64   :  { %88 = dma.hbm_to_vmem [thread:$0]  %s3138_s6, 1536, %s2937_s8, [#allocation12], %s2820_s13, %s2820_s13, %s2821_s14  }
  0x65   :  { %2808 = dma.done.wait [#allocation3], 256  }
  0x66   :  { %2809 = vsyncadd [#allocation3], 4294967040 }
  0x67   :  { %2810 = dma.done.wait [#allocation6], 2304  }
  0x68   :  { %2811 = vsyncadd [#allocation6], 4294964992 }
  0x69   :  { %2812 = dma.done.wait [#allocation9], 512  }
  0x6a   :  { %2813 = vsyncadd [#allocation9], 4294966784 }
  0x6b   :  { %2814 = dma.done.wait [#allocation12], 1536  }
  0x6c   :  { %2815 = vsyncadd [#allocation12], 4294965760  ;;  %vm113_vm0 = vcmask 261120   ;;  %v109_v0 = vld [vmem:[#allocation7] sm:$0xff]  ;;  %v110_v1 = vld [vmem:[#allocation7 + $0x8] sm:$0xff]  ;;  %vm205_vm1 = vcmask 130048  }
  0x6d   :  { %v111_v2 = vld [vmem:[#allocation7 + $0x10] sm:$0xff]  ;;  %v2480_v3 = vpack.c.bf16 %v110_v1, %v109_v0  ;;  %v112_v4 = vld [vmem:[#allocation7 + $0x18] sm:$0xff]  ;;  %v107_v5 = vld [vmem:[#allocation2] sm:$0xff]  ;;  %s2826_s6 = smov 32   ;;  %s2827_s13 = smov 96   ;;  %vm2830_vm2 = vmmov 0  }
  0x6e   :  { %v2484_v6 = vpack.c.bf16 %v112_v4, %v111_v2  ;;  %2307 = vmatprep.mubr.msk.f32.mxu1 %vm113_vm0, %v107_v5  ;;  %v108_v7 = vld [vmem:[#allocation2 + $0x8] sm:$0xff]  ;;  %v2976_v8 = vld [vmem:[#allocation5] sm:$0xff]  ;;  %s2828_s14 = smov 64   ;;  %v476_v12 = vld [vmem:[#allocation7 + $0x20] sm:$0xff]  ;;  %vm1308_vm3 = vcmask 64512   ;;  %vm2152_vm4 = vcmask 253952  }
  0x6f   :  { %2481 = vmatprep.subr.bf16.mxu1 %v2480_v3  ;;  %v477_v13 = vld [vmem:[#allocation7 + $0x28] sm:$0xff]  ;;  %v2983_v25 = vld [vmem:[#allocation5 + $0x8] sm:$0xff]  ;;  %v2985_v27 = vld [vmem:[#allocation5 + $0x10] sm:$0xff] }
  0x70   :  { %2483 = vmatpush3.bf16.msra.mxu1 %v2480_v3  ;;  %v2500_v14 = vpack.c.bf16 %v477_v13, %v476_v12  ;;  %v2991_v29 = vld [vmem:[#allocation5 + $0x18] sm:$0xff]  ;;  %v2993_v30 = vld [vmem:[#allocation5 + $0x20] sm:$0xff]  ;;  %v2999_v31 = vld [vmem:[#allocation5 + $0x28] sm:$0xff] }
  0x71   :  { %2485 = vmatprep.subr.bf16.mxu1 %v2484_v6  ;;  %v478_v32 = vld [vmem:[#allocation7 + $0x30] sm:$0xff]  ;;  %v479_v33 = vld [vmem:[#allocation7 + $0x38] sm:$0xff]  ;;  %v815_v44 = vld [vmem:[#allocation7 + $0x40] sm:$0xff] }
  0x72   :  { %2501 = vmatprep.subr.bf16.mxu0 %v2500_v14  ;;  %v2504_v34 = vpack.c.bf16 %v479_v33, %v478_v32  ;;  %v816_v45 = vld [vmem:[#allocation7 + $0x48] sm:$0xff]  ;;  %v817_v59 = vld [vmem:[#allocation7 + $0x50] sm:$0xff]  ;;  %v818_v60 = vld [vmem:[#allocation7 + $0x58] sm:$0xff] }
  0x73   :  { %2503 = vmatpush3.bf16.msra.mxu0 %v2500_v14  ;;  %v2520_v46 = vpack.c.bf16 %v816_v45, %v815_v44  ;;  %v2524_v61 = vpack.c.bf16 %v818_v60, %v817_v59  ;;  %v1152_v33 = vld [vmem:[#allocation8] sm:$0xff]  ;;  %v3067_v45 = vld [vmem:[#allocation10 + $0x8] sm:$0xff] }
  0x74   :  { %2487 = vmatpush3.bf16.msra.mxu1 %v2484_v6  ;;  %2505 = vmatprep.subr.bf16.mxu0 %v2504_v34 }
  0x77   :  { %2308 = vmatmul.mubr.msk.f32.vlgmr.msra.gmra.mrb[0].mxu1 %vm113_vm0, %v108_v7  ;;  %2507 = vmatpush3.bf16.msra.mxu0 %v2504_v34 }
  0x78   :  { %2314 = vmatprep.mubr.msk.f32.mxu1 %vm205_vm1, %v2976_v8  ;;  %2521 = vmatprep.subr.bf16.mxu0 %v2520_v46 }
 0x14a   :  { %v2309_v9 = vpop.f32.mrb[0].mxu1 }
 0x14b   :  { %v186_v10 = vpop.f32.mrb[1].mxu1 }
 0x14c   :  { %v2619_v11 = vpack.i.bf16 %v2309_v9, %v186_v10 }
 0x14e   :  { %2620 = vrot.lane.b32.xlu1 %v2619_v11, %s2826_s6  ;;  %2610 = vrot.lane.b32.xlu0 %v2619_v11, %s2827_s13 }
 0x152   :  { %2615 = vrot.lane.b32.xlu0 %v2619_v11, %s2828_s14 }
 0x1c0   :  { %v2611_v15 = vpop.permute.xlu0 %2610  ;;  %v2621_v18 = vpop.permute.xlu1 %2620 }
 0x1c1   :  { %v2613_v16 = vunpack.i.h.bf16 %v2611_v15  ;;  %v2612_v17 = vunpack.i.l.bf16 %v2611_v15  ;;  %v2623_v21 = vunpack.i.h.bf16 %v2621_v18  ;;  %v2622_v22 = vunpack.i.l.bf16 %v2621_v18 }
 0x1c3   :  { %v2488_v19 = vpack.c.bf16 %v2613_v16, %v2612_v17  ;;  %v2496_v28 = vpack.c.bf16 %v2623_v21, %v2622_v22 }
 0x1c4   :  { %v2616_v20 = vpop.permute.xlu0 %2615 }
 0x1c5   :  { %v2618_v23 = vunpack.i.h.bf16 %v2616_v20  ;;  %v2617_v24 = vunpack.i.l.bf16 %v2616_v20  ;;  %2489 = vmatprep.subr.bf16.mxu1 %v2488_v19  ;;  %v2831_v20 = vmov 0.0  }
 0x1c6   :  { %2491 = vmatpush3.bf16.msra.mxu1 %v2488_v19  ;;  %v2829_v19 = vmov 0.0|0.0  }
 0x1c7   :  { %v2492_v26 = vpack.c.bf16 %v2618_v23, %v2617_v24 }
 0x1c9   :  { %2315 = vmatmul.mubr.msk.f32.vlgmr.msra.gmra.mrb[2].mxu1 %vm205_vm1, %v2983_v25  ;;  %2493 = vmatprep.subr.bf16.mxu1 %v2492_v26 }
 0x1ca   :  { %2495 = vmatpush3.bf16.msra.mxu1 %v2492_v26  ;;  %2321 = vmatprep.mubr.msk.f32.mxu1 %vm205_vm1, %v2985_v27  ;;  %v1227_v26 = vld [vmem:[#allocation11 + $0x8] sm:$0xff] }
 0x1cb   :  { %2497 = vmatprep.subr.bf16.mxu1 %v2496_v28 }
 0x1d1   :  { %2322 = vmatmul.mubr.msk.f32.vlgmr.msra.gmra.mrb[2].mxu1 %vm205_vm1, %v2991_v29 }
 0x1d2   :  { %2499 = vmatpush3.bf16.msra.mxu1 %v2496_v28  ;;  %2328 = vmatprep.mubr.msk.f32.mxu1 %vm205_vm1, %v2993_v30  ;;  %v1151_v28 = vld [vmem:[%s3135_s3] sm:$0xff]  ;;  %s2832_s3 = smov [#allocation13]  }
 0x1d3   :  { %s2160_s26 = sshll.u32 %s2832_s3, 4  ;;  %s2161_s26 = int_to_ptr.vmem [resolvable:$true] %s2160_s26 }
 0x1d4   :  { %s2786_s28 = scalar_lea.vmem %s2161_s26, 16  ;;  %s2790_s29 = scalar_lea.vmem %s2161_s26, 32 }
 0x1d5   :  { %p2787_p6 = scmp.ne.s32.totalorder %s2161_s26, %s2786_s28  ;;  %p2791_p7 = scmp.lt.s32.totalorder %s2161_s26, %s2161_s26 }
 0x1d6   :  { %p2792_p8 = scmp.lt.s32.totalorder %s2790_s29, %s2786_s28 }
 0x1d8   :  { %p2793_p9 = por %p2792_p8, %p2791_p7 }
 0x1d9   :  { %2329 = vmatmul.mubr.msk.f32.vlgmr.msra.gmra.mrb[2].mxu1 %vm205_vm1, %v2999_v31 }
 0x1da   :  { %2346 = vmatprep.mubr.msk.f32.mxu1 %vm205_vm1, %v2976_v8  ;;  %p2794_p10 = pnand %p2793_p9, %p2787_p6 }
 0x2ac   :  { %v2330_v35 = vpop.f32.mrb[2].mxu1 }
 0x2ad   :  { %v2561_v36 = vadd.f32 %v2330_v35, %v2309_v9  ;;  %v462_v37 = vpop.f32.mrb[3].mxu1 }
 0x2ae   :  { %v2562_v38 = vadd.f32 %v462_v37, %v186_v10 }
 0x2af   :  { %v474_v40 = vmax.f32 %v2561_v36, 0.0 }
 0x2b0   :  { %v473_v39 = vmax.f32 %v2562_v38, 0.0 }
 0x2b2   :  { %2339 = vmatprep.mubr.msk.f32.mxu0 %vm113_vm0, %v473_v39  ;;  %v1543_v39 = vld [vmem:[#allocation11 + $0x20] sm:$0xff] }
 0x2b3   :  { %2340 = vmatmul.mubr.msk.f32.vlgmr.msra.gmra.mrb[0].mxu0 %vm113_vm0, %v474_v40  ;;  %v1544_v40 = vld [vmem:[#allocation11 + $0x28] sm:$0xff] }
 0x2b4   :  { %2523 = vmatpush3.bf16.msra.mxu0 %v2520_v46 }
 0x2b5   :  { %2525 = vmatprep.subr.bf16.mxu0 %v2524_v61 }
 0x2b8   :  { %2527 = vmatpush3.bf16.msra.mxu0 %v2524_v61 }
 0x386   :  { %v2341_v41 = vpop.f32.mrb[0].mxu0 }
 0x387   :  { %v552_v42 = vpop.f32.mrb[1].mxu0 }
 0x388   :  { %v2629_v43 = vpack.i.bf16 %v2341_v41, %v552_v42 }
 0x38a   :  { %2630 = vrot.lane.b32.xlu0 %v2629_v43, %s2828_s14  ;;  %2625 = vrot.lane.b32.xlu1 %v2629_v43, %s2827_s13 }
 0x38e   :  { %2635 = vrot.lane.b32.xlu1 %v2629_v43, %s2826_s6 }
 0x3fc   :  { %v2631_v47 = vpop.permute.xlu0 %2630  ;;  %v2626_v48 = vpop.permute.xlu1 %2625 }
 0x3fd   :  { %v2633_v49 = vunpack.i.h.bf16 %v2631_v47  ;;  %v2632_v50 = vunpack.i.l.bf16 %v2631_v47  ;;  %v2628_v51 = vunpack.i.h.bf16 %v2626_v48  ;;  %v2627_v52 = vunpack.i.l.bf16 %v2626_v48  ;;  %v3074_v47 = vld [vmem:[#allocation10 + $0x10] sm:$0xff]  ;;  %v1545_v48 = vld [vmem:[#allocation11 + $0x30] sm:$0xff] }
 0x3ff   :  { %v2508_v53 = vpack.c.bf16 %v2628_v51, %v2627_v52  ;;  %v2512_v55 = vpack.c.bf16 %v2633_v49, %v2632_v50  ;;  %v1546_v49 = vld [vmem:[#allocation11 + $0x38] sm:$0xff] }
 0x400   :  { %v2636_v54 = vpop.permute.xlu1 %2635  ;;  %v2553_v50 = vpack.c.bf16 %v1546_v49, %v1545_v48 }
 0x401   :  { %v2638_v56 = vunpack.i.h.bf16 %v2636_v54  ;;  %v2637_v57 = vunpack.i.l.bf16 %v2636_v54  ;;  %2509 = vmatprep.subr.bf16.mxu1 %v2508_v53 }
 0x402   :  { %2511 = vmatpush3.bf16.msra.mxu1 %v2508_v53 }
 0x403   :  { %2513 = vmatprep.subr.bf16.mxu1 %v2512_v55  ;;  %v2516_v58 = vpack.c.bf16 %v2638_v56, %v2637_v57  ;;  %v1845_v57 = vld [vmem:[#allocation11 + $0x40] sm:$0xff] }
 0x405   :  { %2347 = vmatmul.mubr.msk.f32.vlgmr.msra.gmra.mrb[4].mxu1 %vm205_vm1, %v2983_v25 }
 0x406   :  { %2515 = vmatpush3.bf16.msra.mxu1 %v2512_v55  ;;  %2353 = vmatprep.mubr.msk.f32.mxu1 %vm205_vm1, %v2985_v27 }
 0x407   :  { %2517 = vmatprep.subr.bf16.mxu1 %v2516_v58 }
 0x40d   :  { %2354 = vmatmul.mubr.msk.f32.vlgmr.msra.gmra.mrb[4].mxu1 %vm205_vm1, %v2991_v29 }
 0x40e   :  { %2519 = vmatpush3.bf16.msra.mxu1 %v2516_v58  ;;  %2360 = vmatprep.mubr.msk.f32.mxu1 %vm205_vm1, %v2993_v30  ;;  %v1846_v58 = vld [vmem:[#allocation11 + $0x48] sm:$0xff] }
 0x40f   :  { %2540 = vmatprep.subr.bf16.mxu1 %v2829_v19  ;;  %v2556_v59 = vpack.c.bf16 %v1846_v58, %v1845_v57 }
 0x415   :  { %2361 = vmatmul.mubr.msk.f32.vlgmr.msra.gmra.mrb[4].mxu1 %vm205_vm1, %v2999_v31 }
 0x416   :  { %2399 = vmatprep.mubr.msk.f32.mxu1 %vm2830_vm2, %v2831_v20 }
 0x4e8   :  { %v2362_v62 = vpop.f32.mrb[4].mxu1 }
 0x4e9   :  { %v2563_v63 = vadd.f32 %v2362_v62, %v2341_v41  ;;  %v801_v0 = vpop.f32.mrb[5].mxu1  ;;  %v2550_v41 = vpack.c.bf16 %v1544_v40, %v1543_v39 }
 0x4ea   :  { %v2564_v1 = vadd.f32 %v801_v0, %v552_v42  ;;  %v3059_v42 = vld [vmem:[#allocation10] sm:$0xff]  ;;  %v1848_v0 = vld [vmem:[#allocation11 + $0x58] sm:$0xff] }
 0x4eb   :  { %v813_v3 = vmax.f32 %v2563_v63, 0.0  ;;  %v1847_v63 = vld [vmem:[#allocation11 + $0x50] sm:$0xff] }
 0x4ec   :  { %v812_v2 = vmax.f32 %v2564_v1, 0.0  ;;  %v2559_v1 = vpack.c.bf16 %v1848_v0, %v1847_v63 }
 0x4ee   :  { %2371 = vmatprep.mubr.msk.f32.mxu0 %vm113_vm0, %v812_v2 }
 0x4ef   :  { %2372 = vmatmul.mubr.msk.f32.vlgmr.msra.gmra.mrb[2].mxu0 %vm113_vm0, %v813_v3 }
 0x4f0   :  { %2378 = vmatprep.mubr.msk.f32.mxu0 %vm205_vm1, %v2976_v8 }
 0x5c2   :  { %v2373_v4 = vpop.f32.mrb[2].mxu0 }
 0x5c3   :  { %v891_v5 = vpop.f32.mrb[3].mxu0 }
 0x5c4   :  { %v2644_v6 = vpack.i.bf16 %v2373_v4, %v891_v5 }
 0x5c6   :  { %2645 = vrot.lane.b32.xlu1 %v2644_v6, %s2828_s14  ;;  %2640 = vrot.lane.b32.xlu0 %v2644_v6, %s2827_s13 }
 0x5ca   :  { %2650 = vrot.lane.b32.xlu0 %v2644_v6, %s2826_s6 }
 0x638   :  { %v2646_v7 = vpop.permute.xlu1 %2645  ;;  %v2641_v9 = vpop.permute.xlu0 %2640 }
 0x639   :  { %v2648_v10 = vunpack.i.h.bf16 %v2646_v7  ;;  %v2647_v11 = vunpack.i.l.bf16 %v2646_v7  ;;  %v2643_v12 = vunpack.i.h.bf16 %v2641_v9  ;;  %v2642_v13 = vunpack.i.l.bf16 %v2641_v9 }
 0x63b   :  { %v2528_v14 = vpack.c.bf16 %v2643_v12, %v2642_v13  ;;  %v2532_v16 = vpack.c.bf16 %v2648_v10, %v2647_v11 }
 0x63c   :  { %v2651_v15 = vpop.permute.xlu0 %2650 }
 0x63d   :  { %v2653_v17 = vunpack.i.h.bf16 %v2651_v15  ;;  %v2652_v8 = vunpack.i.l.bf16 %v2651_v15  ;;  %2529 = vmatprep.subr.bf16.mxu0 %v2528_v14 }
 0x63e   :  { %2531 = vmatpush3.bf16.msra.mxu0 %v2528_v14 }
 0x63f   :  { %2533 = vmatprep.subr.bf16.mxu0 %v2532_v16  ;;  %v2536_v18 = vpack.c.bf16 %v2653_v17, %v2652_v8 }
 0x641   :  { %2379 = vmatmul.mubr.msk.f32.vlgmr.msra.gmra.mrb[4].mxu0 %vm205_vm1, %v2983_v25  ;;  %v1226_v25 = vld [vmem:[#allocation11] sm:$0xff] }
 0x642   :  { %2535 = vmatpush3.bf16.msra.mxu0 %v2532_v16  ;;  %2385 = vmatprep.mubr.msk.f32.mxu0 %vm205_vm1, %v2985_v27 }
 0x643   :  { %2537 = vmatprep.subr.bf16.mxu0 %v2536_v18 }
 0x649   :  { %2386 = vmatmul.mubr.msk.f32.vlgmr.msra.gmra.mrb[4].mxu0 %vm205_vm1, %v2991_v29  ;;  %v2544_v29 = vpack.c.bf16 %v1227_v26, %v1226_v25 }
 0x64a   :  { %2539 = vmatpush3.bf16.msra.mxu0 %v2536_v18  ;;  %2392 = vmatprep.mubr.msk.f32.mxu0 %vm205_vm1, %v2993_v30  ;;  %v1228_v30 = vld [vmem:[#allocation11 + $0x10] sm:$0xff] }
 0x64b   :  { %2413 = vmatprep.subr.mxu0 %v2831_v20 }
 0x651   :  { %2393 = vmatmul.mubr.msk.f32.vlgmr.msra.gmra.mrb[4].mxu0 %vm205_vm1, %v2999_v31  ;;  %v1229_v31 = vld [vmem:[#allocation11 + $0x18] sm:$0xff] }
 0x652   :  { %2415 = vmatprep.mubr.msk.f32.mxu0 %vm2830_vm2, %v2831_v20  ;;  %v2547_v32 = vpack.c.bf16 %v1229_v31, %v1228_v30 }
 0x724   :  { %v2394_v21 = vpop.f32.mrb[4].mxu0 }
 0x725   :  { %v2565_v22 = vadd.f32 %v2394_v21, %v2373_v4  ;;  %v1140_v23 = vpop.f32.mrb[5].mxu0 }
 0x726   :  { %v2566_v24 = vadd.f32 %v1140_v23, %v891_v5 }
 0x728   :  { %v2541_v27 = vpack.c.bf16 %v2565_v22, %v2566_v24 }
 0x72a   :  { %2542 = vmatpush3.bf16.msra.mxu1 %v2541_v27 }
 0x72b   :  { %2543 = vmatprep.subr.bf16.mxu1 %v2829_v19 }
 0x72d   :  { %2400 = vmatmul.mubr.msk.f32.vlgmr.msra.gmra.mrb[6].mxu1 %vm205_vm1, %v1151_v28 }
 0x72e   :  { %2545 = vmatpush3.bf16.msra.mxu1 %v2544_v29  ;;  %2410 = vmatprep.mubr.msk.f32.mxu1 %vm2830_vm2, %v2831_v20 }
 0x72f   :  { %2546 = vmatprep.subr.bf16.mxu1 %v2829_v19 }
 0x732   :  { %2548 = vmatpush3.bf16.msra.mxu1 %v2547_v32 }
 0x733   :  { %2549 = vmatprep.subr.bf16.mxu1 %v2829_v19 }
 0x800   :  { %v1222_v34 = vpop.f32.mrb[6].mxu1 }
 0x801   :  { %v1223_v35 = vadd.f32 %v1222_v34, %v1152_v33  ;;  %v2401_v36 = vpop.f32.mrb[7].mxu1 }
 0x803   :  { %2411 = vmatmul.mubr.msk.f32.vlgmr.msra.gmra.mrb[8].mxu1 %vm113_vm0, %v1223_v35 }
 0x804   :  { %2436 = vmatprep.mubr.msk.f32.mxu1 %vm2830_vm2, %v2831_v20  ;;  %2551 = vmatpush3.bf16.msra.mxu1 %v2550_v41 }
 0x805   :  { %2552 = vmatprep.subr.bf16.mxu1 %v2829_v19 }
 0x808   :  { %2554 = vmatpush3.bf16.msra.mxu1 %v2553_v50 }
 0x809   :  { %2439 = vmatprep.subr.mxu1 %v2831_v20 }
 0x8d6   :  { %v1299_v37 = vpop.f32.mrb[8].mxu1 }
 0x8d7   :  { %1385 = vrot.lane.b32.xlu0 %v1299_v37, %s2828_s14  ;;  %1305 = vrot.lane.b32.xlu1 %v1299_v37, %s2827_s13  ;;  %v2412_v38 = vpop.f32.mrb[9].mxu1 }
 0x8db   :  { %1464 = vrot.lane.b32.xlu1 %v1299_v37, %s2826_s6 }
 0x949   :  { %v1306_v43 = vpop.permute.xlu1 %1305  ;;  %v1386_v44 = vpop.permute.xlu0 %1385 }
 0x94a   :  { %2414 = vmatpush3.msra.mxu0 %v1306_v43 }
 0x94b   :  { %2416 = vmatmul.mubr.msk.f32.vlgmr.msra.gmra.mrb[6].mxu0 %vm1308_vm3, %v3059_v42  ;;  %2418 = vmatprep.subr.mxu0 %v2831_v20 }
 0x94c   :  { %2419 = vmatpush3.msra.mxu0 %v1386_v44  ;;  %2420 = vmatprep.mubr.msk.f32.mxu0 %vm2830_vm2, %v2831_v20 }
 0x94d   :  { %2423 = vmatprep.subr.mxu0 %v2831_v20  ;;  %v1465_v46 = vpop.permute.xlu1 %1464 }
 0x953   :  { %2421 = vmatmul.mubr.msk.f32.vlgmr.msra.gmra.mrb[6].mxu0 %vm1308_vm3, %v3067_v45 }
 0x954   :  { %2424 = vmatpush3.msra.mxu0 %v1465_v46  ;;  %2425 = vmatprep.mubr.msk.f32.mxu0 %vm2830_vm2, %v2831_v20 }
 0x955   :  { %2555 = vmatprep.subr.bf16.mxu0 %v2829_v19 }
 0x95b   :  { %2426 = vmatmul.mubr.msk.f32.vlgmr.msra.gmra.mrb[6].mxu0 %vm1308_vm3, %v3074_v47 }
 0x95c   :  { %2462 = vmatprep.mubr.msk.f32.mxu0 %vm2830_vm2, %v2831_v20  ;;  %2557 = vmatpush3.bf16.msra.mxu0 %v2556_v59 }
 0x95d   :  { %2558 = vmatprep.subr.bf16.mxu0 %v2829_v19 }
 0x960   :  { %2560 = vmatpush3.bf16.msra.mxu0 %v2559_v1 }
 0x961   :  { %2465 = vmatprep.subr.mxu0 %v2831_v20 }
 0xa2e   :  { %v1536_v51 = vpop.f32.mrb[6].mxu0 }
 0xa2f   :  { %v2567_v52 = vadd.f32 %v1536_v51, %v1299_v37  ;;  %v2427_v53 = vpop.f32.mrb[7].mxu0 }
 0xa31   :  { %v1541_v54 = vmax.f32 %v2567_v52, 0.0 }
 0xa33   :  { %2437 = vmatmul.mubr.msk.f32.vlgmr.msra.gmra.mrb[10].mxu1 %vm113_vm0, %v1541_v54 }
 0xa34   :  { %2441 = vmatprep.mubr.msk.f32.mxu1 %vm2830_vm2, %v2831_v20 }
 0xb06   :  { %v1616_v55 = vpop.f32.mrb[10].mxu1 }
 0xb07   :  { %1695 = vrot.lane.b32.xlu1 %v1616_v55, %s2828_s14  ;;  %1621 = vrot.lane.b32.xlu0 %v1616_v55, %s2827_s13  ;;  %v2438_v56 = vpop.f32.mrb[11].mxu1 }
 0xb0b   :  { %1769 = vrot.lane.b32.xlu0 %v1616_v55, %s2826_s6 }
 0xb79   :  { %v1622_v60 = vpop.permute.xlu0 %1621  ;;  %v1696_v61 = vpop.permute.xlu1 %1695 }
 0xb7a   :  { %2440 = vmatpush3.msra.mxu1 %v1622_v60 }
 0xb7b   :  { %2442 = vmatmul.mubr.msk.f32.vlgmr.msra.gmra.mrb[12].mxu1 %vm1308_vm3, %v3059_v42  ;;  %2444 = vmatprep.subr.mxu1 %v2831_v20 }
 0xb7c   :  { %2445 = vmatpush3.msra.mxu1 %v1696_v61  ;;  %2446 = vmatprep.mubr.msk.f32.mxu1 %vm2830_vm2, %v2831_v20 }
 0xb7d   :  { %2449 = vmatprep.subr.mxu1 %v2831_v20  ;;  %v1770_v62 = vpop.permute.xlu0 %1769 }
 0xb83   :  { %2447 = vmatmul.mubr.msk.f32.vlgmr.msra.gmra.mrb[12].mxu1 %vm1308_vm3, %v3067_v45 }
 0xb84   :  { %2450 = vmatpush3.msra.mxu1 %v1770_v62  ;;  %2451 = vmatprep.mubr.msk.f32.mxu1 %vm2830_vm2, %v2831_v20 }
 0xb8b   :  { %2452 = vmatmul.mubr.msk.f32.vlgmr.msra.gmra.mrb[12].mxu1 %vm1308_vm3, %v3074_v47 }
 0xc5e   :  { %v1838_v2 = vpop.f32.mrb[12].mxu1 }
 0xc5f   :  { %v2568_v3 = vadd.f32 %v1838_v2, %v1616_v55  ;;  %v2453_v4 = vpop.f32.mrb[13].mxu1 }
 0xc61   :  { %v1843_v5 = vmax.f32 %v2568_v3, 0.0 }
 0xc63   :  { %2463 = vmatmul.mubr.msk.f32.vlgmr.msra.gmra.mrb[8].mxu0 %vm113_vm0, %v1843_v5 }
 0xc64   :  { %2467 = vmatprep.mubr.msk.f32.mxu0 %vm2830_vm2, %v2831_v20 }
 0xd36   :  { %v1918_v6 = vpop.f32.mrb[8].mxu0 }
 0xd37   :  { %1997 = vrot.lane.b32.xlu0 %v1918_v6, %s2828_s14  ;;  %1923 = vrot.lane.b32.xlu1 %v1918_v6, %s2827_s13  ;;  %v2464_v7 = vpop.f32.mrb[9].mxu0 }
 0xd3b   :  { %2071 = vrot.lane.b32.xlu1 %v1918_v6, %s2826_s6 }
 0xda9   :  { %v1924_v9 = vpop.permute.xlu1 %1923  ;;  %v1998_v10 = vpop.permute.xlu0 %1997 }
 0xdaa   :  { %2466 = vmatpush3.msra.mxu0 %v1924_v9 }
 0xdab   :  { %2468 = vmatmul.mubr.msk.f32.vlgmr.msra.gmra.mrb[10].mxu0 %vm1308_vm3, %v3059_v42  ;;  %2470 = vmatprep.subr.mxu0 %v2831_v20 }
 0xdac   :  { %2471 = vmatpush3.msra.mxu0 %v1998_v10  ;;  %2472 = vmatprep.mubr.msk.f32.mxu0 %vm2830_vm2, %v2831_v20 }
 0xdad   :  { %2475 = vmatprep.subr.mxu0 %v2831_v20  ;;  %v2072_v11 = vpop.permute.xlu1 %2071 }
 0xdb3   :  { %2473 = vmatmul.mubr.msk.f32.vlgmr.msra.gmra.mrb[10].mxu0 %vm1308_vm3, %v3067_v45 }
 0xdb4   :  { %2476 = vmatpush3.msra.mxu0 %v2072_v11  ;;  %2477 = vmatprep.mubr.msk.f32.mxu0 %vm2830_vm2, %v2831_v20 }
 0xdbb   :  { %2478 = vmatmul.mubr.msk.f32.vlgmr.msra.gmra.mrb[10].mxu0 %vm1308_vm3, %v3074_v47 }
 0xe8e   :  { %v2140_v12 = vpop.f32.mrb[10].mxu0 }
 0xe8f   :  { %v2569_v13 = vadd.f32 %v2140_v12, %v1918_v6  ;;  %v2479_v14 = vpop.f32.mrb[11].mxu0 }
 0xe91   :  { %v2145_v15 = vsel %vm113_vm0, %v2569_v13, 0.0 }
 0xe92   :  { %v2146_v16 = vrot.slane %v2145_v15, 4 }
 0xe94   :  { %v2147_v17 = vadd.f32 %v2146_v16, %v2145_v15 }
 0xe96   :  { %v2148_v8 = vrot.slane %v2147_v17, 2 }
 0xe98   :  { %v2149_v18 = vadd.f32 %v2148_v8, %v2147_v17 }
 0xe9a   :  { %v2150_v19 = vrot.slane %v2149_v18, 1 }
 0xe9c   :  { %v2151_v21 = vadd.f32 %v2150_v19, %v2149_v18 }
 0xe9e   :  { %2153 = vst.msk [vmem:[#allocation13] sm:$0x1] %vm2152_vm4, %v2151_v21 }
 0xe9f   :  { %2797 = shalt.err (!%p2794_p10)
}
 0xea0   :  { %s2798_s10 = scalar_lea.hbm %s3139_s7, 16 }
 0xea1   :  { %p2799_p11 = scmp.ne.s32.totalorder %s3139_s7, %s2798_s10  ;;  %p2802_p12 = scmp.lt.u32.totalorder %s2798_s10, %s3139_s7 }
 0xea3   :  { %p2804_p13 = pnand %p2802_p12, %p2799_p11 }
 0xea5   :  { %2807 = shalt.err (!%p2804_p13)
}
 0xea6   :  { %2163 = dma.vmem_to_hbm [thread:$0]  %s2161_s26, 16, %s3139_s7, [#allocation4]  }
 0xea7   :  { %2816 = dma.done.wait [#allocation4], 16  }
 0xea8   :  { %2817 = vsyncadd [#allocation4], 4294967280 }
 0xea9   :  { %2167 = vsyncpa [#allocation3], 1 }
 0xeaa   :  { %2168 = vsyncpa [#allocation6], 1 }
 0xeab   :  { %2169 = vsyncpa [#allocation9], 1 }
 0xeac   :  { %2170 = vsyncpa [#allocation12], 1 }
 0xead   :  { %2171 = vsyncpa [#allocation4], 1 }

</bundles_post_ra>
